<compile_context>
chip_gen: v5e
topology: v5e:2x2
jax: 0.10.0
libtpu: 0.0.40
codegen_flags: <defaults>
</compile_context>

<pallas_src>
import functools

import jax
import jax.numpy as jnp
from jax import lax
from jax.experimental import pallas as pl
from jax.experimental.pallas import tpu as pltpu


def _round_up(x: int, m: int) -> int:
    return ((x + m - 1) // m) * m


def _linear_kernel_bias(x_ref, w_ref, b_ref, o_ref, acc_ref):
    # x_ref: (tm, tk)  w_ref: (tn, tk)  b_ref: (1, tn)  o_ref: (tm, tn)
    k = pl.program_id(2)

    @pl.when(k == 0)
    def _():
        acc_ref[...] = jnp.zeros_like(acc_ref)

    acc_ref[...] += lax.dot_general(
        x_ref[...], w_ref[...],
        dimension_numbers=(((1,), (1,)), ((), ())),
        preferred_element_type=jnp.float32,
    )

    @pl.when(k == pl.num_programs(2) - 1)
    def _():
        o_ref[...] = (acc_ref[...] + b_ref[...].astype(jnp.float32)).astype(o_ref.dtype)


def _linear_kernel_nobias(x_ref, w_ref, o_ref, acc_ref):
    k = pl.program_id(2)

    @pl.when(k == 0)
    def _():
        acc_ref[...] = jnp.zeros_like(acc_ref)

    acc_ref[...] += lax.dot_general(
        x_ref[...], w_ref[...],
        dimension_numbers=(((1,), (1,)), ((), ())),
        preferred_element_type=jnp.float32,
    )

    @pl.when(k == pl.num_programs(2) - 1)
    def _():
        o_ref[...] = acc_ref[...].astype(o_ref.dtype)


@jax.jit
def linear_forward(x, weight, bias=None):
    """x: (*, in_features); weight: (out_features, in_features); bias: (out_features,) or None."""
    *lead, K = x.shape
    N = weight.shape[0]
    M = 1
    for d in lead:
        M *= d
    x2d = x.reshape(M, K)

    # Tile sizes: safe for v7x's 64 MiB VMEM / 32 MiB scoped default while
    # filling the MXU on v5e/v6e/v7x.  For tiny dims, shrink to the padded
    # full extent so the grid degenerates gracefully.
    TM, TN, TK = 256, 256, 512
    tm = min(TM, _round_up(M, 8))
    tn = min(TN, _round_up(N, 128))   # lane-dense output (>=128 multiple)
    tk = min(TK, _round_up(K, 128))   # lane-dense contraction dim
    m_pad = _round_up(M, tm)
    n_pad = _round_up(N, tn)
    k_pad = _round_up(K, tk)

    if (m_pad, k_pad) != (M, K):
        x2d = jnp.pad(x2d, ((0, m_pad - M), (0, k_pad - K)))
    w = weight
    if (n_pad, k_pad) != (N, K):
        w = jnp.pad(w, ((0, n_pad - N), (0, k_pad - K)))

    grid = (m_pad // tm, n_pad // tn, k_pad // tk)
    out_shape = jax.ShapeDtypeStruct((m_pad, n_pad), x.dtype)

    itemsize = jnp.dtype(x.dtype).itemsize
    cost = pl.CostEstimate(
        flops=2 * m_pad * k_pad * n_pad,
        transcendentals=0,
        bytes_accessed=itemsize * (m_pad * k_pad + n_pad * k_pad + m_pad * n_pad + n_pad),
    )
    cparams = pltpu.CompilerParams(
        dimension_semantics=("parallel", "parallel", "arbitrary"),
    )

    x_spec = pl.BlockSpec((tm, tk), lambda i, j, k: (i, k))
    w_spec = pl.BlockSpec((tn, tk), lambda i, j, k: (j, k))
    o_spec = pl.BlockSpec((tm, tn), lambda i, j, k: (i, j))
    scratch = [pltpu.VMEM((tm, tn), jnp.float32)]

    if bias is not None:
        b2d = bias.reshape(1, N)
        if n_pad != N:
            b2d = jnp.pad(b2d, ((0, 0), (0, n_pad - N)))
        b_spec = pl.BlockSpec((1, tn), lambda i, j, k: (0, j))
        out2d = pl.pallas_call(
            _linear_kernel_bias,
            out_shape=out_shape,
            grid_spec=pltpu.PrefetchScalarGridSpec(
                num_scalar_prefetch=0,
                grid=grid,
                in_specs=[x_spec, w_spec, b_spec],
                out_specs=o_spec,
                scratch_shapes=scratch,
            ),
            compiler_params=cparams,
            cost_estimate=cost,
        )(x2d, w, b2d)
    else:
        out2d = pl.pallas_call(
            _linear_kernel_nobias,
            out_shape=out_shape,
            grid_spec=pltpu.PrefetchScalarGridSpec(
                num_scalar_prefetch=0,
                grid=grid,
                in_specs=[x_spec, w_spec],
                out_specs=o_spec,
                scratch_shapes=scratch,
            ),
            compiler_params=cparams,
            cost_estimate=cost,
        )(x2d, w)

    out2d = out2d[:M, :N]
    return out2d.reshape(*lead, N)


def init_linear_params(key, in_features, out_features, bias=True, dtype=jnp.float32):
    """Deterministic init matching torch: Uniform(-1/in_features, 1/in_features)."""
    kw, kb = jax.random.split(key)
    bound = 1.0 / in_features
    weight = jax.random.uniform(
        kw, (out_features, in_features), minval=-bound, maxval=bound, dtype=dtype
    )
    b = (
        jax.random.uniform(
            kb, (out_features,), minval=-bound, maxval=bound, dtype=dtype
        )
        if bias
        else None
    )
    return weight, b


if __name__ == "__main__":
    key = jax.random.PRNGKey(0)
    k_x, k_p = jax.random.split(key)

    batch, seq, in_features, out_features = 2, 8, 32, 64
    x = jax.random.normal(k_x, (batch, seq, in_features), dtype=jnp.float32)

    weight, bias = init_linear_params(k_p, in_features, out_features, bias=True)

    # With bias.
    y = linear_forward(x, weight, bias)
    jax.block_until_ready(y)
    y_ref = jnp.einsum("bsi,oi->bso", x, weight) + bias
    assert y.shape == (batch, seq, out_features)
    assert jnp.allclose(y, y_ref, atol=1e-5, rtol=1e-5)

    # Without bias (exercise the second kernel path).
    y_nb = linear_forward(x, weight, None)
    jax.block_until_ready(y_nb)
    y_nb_ref = jnp.einsum("bsi,oi->bso", x, weight)
    assert jnp.allclose(y_nb, y_nb_ref, atol=1e-5, rtol=1e-5)

    print("KERNEL_OK")
</pallas_src>

<mosaic_0001>
module attributes {stable_mosaic.version = 11 : i64} {
  func.func @_linear_kernel_bias(%arg0: i32, %arg1: i32, %arg2: i32, %arg3: memref<16x128xf32, #tpu.memory_space<vmem>>, %arg4: memref<128x128xf32, #tpu.memory_space<vmem>>, %arg5: memref<1x128xf32, #tpu.memory_space<vmem>>, %arg6: memref<16x128xf32, #tpu.memory_space<vmem>>, %arg7: memref<16x128xf32, #tpu.memory_space<vmem>>) attributes {dimension_semantics = [#tpu.dimension_semantics<parallel>, #tpu.dimension_semantics<parallel>, #tpu.dimension_semantics<arbitrary>], iteration_bounds = array<i64: 1, 1, 1>, scalar_prefetch = 0 : i64, scratch_operands = 1 : i64, tpu.core_type = #tpu.core_type<tc>, window_params = [{transform_indices = @transform_0, window_bounds = array<i64: 16, 128>}, {transform_indices = @transform_1, window_bounds = array<i64: 128, 128>}, {transform_indices = @transform_2, window_bounds = array<i64: 1, 128>}, {transform_indices = @transform_3, window_bounds = array<i64: 16, 128>}]} {
    %c0_i32 = arith.constant 0 : i32
    %0 = arith.cmpi eq, %arg2, %c0_i32 : i32
    %1 = arith.extui %0 : i1 to i32
    %c0_i32_0 = arith.constant 0 : i32
    %2 = arith.cmpi ne, %1, %c0_i32_0 : i32
    scf.if %2 {
      %cst_10 = arith.constant 0.000000e+00 : f32
      %12 = vector.broadcast %cst_10 : f32 to vector<16x128xf32>
      %c0_11 = arith.constant 0 : index
      %c0_12 = arith.constant 0 : index
      %13 = vector.load %arg7[%c0_11, %c0_12] : memref<16x128xf32, #tpu.memory_space<vmem>>, vector<16x128xf32>
      tpu.vector_store %arg7[%c0_11, %c0_12], %12 {strides = array<i32>} : memref<16x128xf32, #tpu.memory_space<vmem>>, vector<16x128xf32>,
    } else {
    }
    %c0 = arith.constant 0 : index
    %c0_1 = arith.constant 0 : index
    %3 = vector.load %arg7[%c0, %c0_1] : memref<16x128xf32, #tpu.memory_space<vmem>>, vector<16x128xf32>
    %c0_2 = arith.constant 0 : index
    %c0_3 = arith.constant 0 : index
    %4 = vector.load %arg3[%c0_2, %c0_3] : memref<16x128xf32, #tpu.memory_space<vmem>>, vector<16x128xf32>
    %c0_4 = arith.constant 0 : index
    %c0_5 = arith.constant 0 : index
    %5 = vector.load %arg4[%c0_4, %c0_5] : memref<128x128xf32, #tpu.memory_space<vmem>>, vector<128x128xf32>
    %cst = arith.constant dense<0.000000e+00> : vector<16x128xf32>
    %6 = tpu.matmul %4, %5, %cst {dimension_numbers = #tpu.dot_dimension_numbers<[1], [1], [0], [0], [0, 0, 1, 0], [], []>} : vector<16x128xf32>, vector<128x128xf32>, vector<16x128xf32> -> vector<16x128xf32>
    %7 = arith.addf %3, %6 : vector<16x128xf32>
    %c0_6 = arith.constant 0 : index
    %c0_7 = arith.constant 0 : index
    %8 = vector.load %arg7[%c0_6, %c0_7] : memref<16x128xf32, #tpu.memory_space<vmem>>, vector<16x128xf32>
    tpu.vector_store %arg7[%c0_6, %c0_7], %7 {strides = array<i32>} : memref<16x128xf32, #tpu.memory_space<vmem>>, vector<16x128xf32>,
    %c0_i32_8 = arith.constant 0 : i32
    %9 = arith.cmpi eq, %arg2, %c0_i32_8 : i32
    %10 = arith.extui %9 : i1 to i32
    %c0_i32_9 = arith.constant 0 : i32
    %11 = arith.cmpi ne, %10, %c0_i32_9 : i32
    scf.if %11 {
      %c0_10 = arith.constant 0 : index
      %c0_11 = arith.constant 0 : index
      %12 = vector.load %arg7[%c0_10, %c0_11] : memref<16x128xf32, #tpu.memory_space<vmem>>, vector<16x128xf32>
      %c0_12 = arith.constant 0 : index
      %c0_13 = arith.constant 0 : index
      %13 = vector.load %arg5[%c0_12, %c0_13] : memref<1x128xf32, #tpu.memory_space<vmem>>, vector<1x128xf32>
      %14 = vector.broadcast %13 : vector<1x128xf32> to vector<16x128xf32>
      %15 = arith.addf %12, %14 : vector<16x128xf32>
      %c0_14 = arith.constant 0 : index
      %c0_15 = arith.constant 0 : index
      %16 = vector.load %arg6[%c0_14, %c0_15] : memref<16x128xf32, #tpu.memory_space<vmem>>, vector<16x128xf32>
      tpu.vector_store %arg6[%c0_14, %c0_15], %15 {strides = array<i32>} : memref<16x128xf32, #tpu.memory_space<vmem>>, vector<16x128xf32>,
    } else {
    }
    return
  }
  func.func @transform_0(%arg0: i32, %arg1: i32, %arg2: i32) -> (i32, i32) {
    %c0_i32 = arith.constant 0 : i32
    return %arg0, %arg2 : i32, i32
  }
  func.func @transform_1(%arg0: i32, %arg1: i32, %arg2: i32) -> (i32, i32) {
    %c0_i32 = arith.constant 0 : i32
    return %arg1, %arg2 : i32, i32
  }
  func.func @transform_2(%arg0: i32, %arg1: i32, %arg2: i32) -> (i32, i32) {
    %c0_i32 = arith.constant 0 : i32
    %c0_i32_0 = arith.constant 0 : i32
    return %c0_i32, %arg1 : i32, i32
  }
  func.func @transform_3(%arg0: i32, %arg1: i32, %arg2: i32) -> (i32, i32) {
    %c0_i32 = arith.constant 0 : i32
    return %arg0, %arg1 : i32, i32
  }
}

</mosaic_0001>

<bundles_post_ra>
// kernel: linear_forward.1
= control target key start
LH: loop header
LB: loop body
LE: loop exit
PB: predicated region body
PF: predicated region fallthrough
CT: control target
= control target key end

     0   :  { %s184_s1 = inlined_call_operand.vmem [shape: f32[128,128], index: 1, kind: input, shape index: {}]   ;;  %s185_s2 = inlined_call_operand.vmem [shape: f32[1,128], index: 2, kind: input, shape index: {}]   ;;  %s186_s0 = inlined_call_operand.vmem [shape: f32[16,128], index: 0, kind: input, shape index: {}]   ;;  %s187_s3 = inlined_call_operand.vmem [shape: f32[16,128], index: 3, kind: output, shape index: {}]  }
   0x1   :  { %v39_v0 = vld [vmem:[%s184_s1 + $0x78] sm:$0xff]  ;;  %v38_v1 = vld [vmem:[%s184_s1 + $0x70] sm:$0xff]  ;;  %v37_v2 = vld [vmem:[%s184_s1 + $0x68] sm:$0xff] }
   0x2   :  { %40 = vmatpush.xpose.msra.mxu0 %v39_v0  ;;  %84 = vmatpush.xpose.msra.mxu1 %v39_v0  ;;  %v36_v3 = vld [vmem:[%s184_s1 + $0x60] sm:$0xff]  ;;  %v35_v4 = vld [vmem:[%s184_s1 + $0x58] sm:$0xff]  ;;  %v34_v5 = vld [vmem:[%s184_s1 + $0x50] sm:$0xff] }
   0x3   :  { %v33_v6 = vld [vmem:[%s184_s1 + $0x48] sm:$0xff]  ;;  %v32_v7 = vld [vmem:[%s184_s1 + $0x40] sm:$0xff]  ;;  %v31_v8 = vld [vmem:[%s184_s1 + $0x38] sm:$0xff] }
   0x4   :  { %v30_v9 = vld [vmem:[%s184_s1 + $0x30] sm:$0xff]  ;;  %v29_v10 = vld [vmem:[%s184_s1 + $0x28] sm:$0xff]  ;;  %v28_v11 = vld [vmem:[%s184_s1 + $0x20] sm:$0xff] }
   0x5   :  { %v27_v12 = vld [vmem:[%s184_s1 + $0x18] sm:$0xff]  ;;  %v26_v13 = vld [vmem:[%s184_s1 + $0x10] sm:$0xff]  ;;  %v25_v14 = vld [vmem:[%s184_s1 + $0x8] sm:$0xff] }
   0x6   :  { %41 = vmatpush.xpose.msra.mxu0 %v38_v1  ;;  %85 = vmatpush.xpose.msra.mxu1 %v38_v1  ;;  %v24_v15 = vld [vmem:[%s184_s1] sm:$0xff]  ;;  %v23_v17 = vld [vmem:[%s186_s0 + $0x8] sm:$0xff] }
   0x7   :  { %v22_v16 = vld [vmem:[%s186_s0] sm:$0xff] }
   0x8   :  { %v100_v18 = vld [vmem:[%s185_s2] ss:$0 sm:$0xff] }
   0xa   :  { %42 = vmatpush.xpose.msra.mxu0 %v37_v2  ;;  %86 = vmatpush.xpose.msra.mxu1 %v37_v2 }
   0xe   :  { %43 = vmatpush.xpose.msra.mxu0 %v36_v3  ;;  %87 = vmatpush.xpose.msra.mxu1 %v36_v3 }
  0x12   :  { %44 = vmatpush.xpose.msra.mxu0 %v35_v4  ;;  %88 = vmatpush.xpose.msra.mxu1 %v35_v4 }
  0x16   :  { %45 = vmatpush.xpose.msra.mxu0 %v34_v5  ;;  %89 = vmatpush.xpose.msra.mxu1 %v34_v5 }
  0x1a   :  { %46 = vmatpush.xpose.msra.mxu0 %v33_v6  ;;  %90 = vmatpush.xpose.msra.mxu1 %v33_v6 }
  0x1e   :  { %47 = vmatpush.xpose.msra.mxu0 %v32_v7  ;;  %91 = vmatpush.xpose.msra.mxu1 %v32_v7 }
  0x22   :  { %48 = vmatpush.xpose.msra.mxu0 %v31_v8  ;;  %92 = vmatpush.xpose.msra.mxu1 %v31_v8 }
  0x26   :  { %49 = vmatpush.xpose.msra.mxu0 %v30_v9  ;;  %93 = vmatpush.xpose.msra.mxu1 %v30_v9 }
  0x2a   :  { %50 = vmatpush.xpose.msra.mxu0 %v29_v10  ;;  %94 = vmatpush.xpose.msra.mxu1 %v29_v10 }
  0x2e   :  { %51 = vmatpush.xpose.msra.mxu0 %v28_v11  ;;  %95 = vmatpush.xpose.msra.mxu1 %v28_v11 }
  0x32   :  { %52 = vmatpush.xpose.msra.mxu0 %v27_v12  ;;  %96 = vmatpush.xpose.msra.mxu1 %v27_v12 }
  0x36   :  { %53 = vmatpush.xpose.msra.mxu0 %v26_v13  ;;  %97 = vmatpush.xpose.msra.mxu1 %v26_v13 }
  0x3a   :  { %54 = vmatpush.xpose.msra.mxu0 %v25_v14  ;;  %98 = vmatpush.xpose.msra.mxu1 %v25_v14 }
  0x3e   :  { %55 = vmatpush.xpose.msra.mxu0 %v24_v15  ;;  %99 = vmatpush.xpose.msra.mxu1 %v24_v15 }
  0x41   :  { %56 = vmatmul.f32.vlgmr.msra.gmra.mxu0 %v22_v16  ;;  %59 = vmatmul.f32.vlgmr.msra.gmra.mxu1 %v23_v17 }
  0xbe   :  { %v57_v19 = vpop.f32.mrf.mxu0  ;;  %v60_v20 = vpop.f32.mrf.mxu1 }
  0xbf   :  { %v76_v21 = vadd.f32 %v100_v18, %v57_v19  ;;  %v77_v22 = vadd.f32 %v100_v18, %v60_v20 }
  0xc1   :  { %78 = vst [vmem:[%s187_s3] sm:$0xff] %v76_v21 }
  0xc2   :  { %79 = vst [vmem:[%s187_s3 + $0x8] sm:$0xff] %v77_v22 }

</bundles_post_ra>
